<compile_context>
chip_gen: v6e
topology: v6e:2x2x1
jax: 0.10.0
libtpu: 0.0.40
codegen_flags: <defaults>
</compile_context>

<pallas_src>
import math

import jax
import jax.numpy as jnp
from jax.experimental import pallas as pl
from jax.experimental.pallas import tpu as pltpu


def _glu_kernel_split(a_ref, g_ref, o_ref):
    """Fast path: 'out' and 'gate' halves arrive as separate lane-aligned tiles."""
    a = a_ref[...].astype(jnp.float32)
    g = g_ref[...].astype(jnp.float32)
    # exp -> EUP; exact reciprocal (use approx=True only if ~1e-3 error is OK).
    sig = pl.reciprocal(1.0 + jnp.exp(-g))
    o_ref[...] = (a * sig).astype(o_ref.dtype)


def _glu_kernel_fused(x_ref, o_ref):
    """Fallback: one tile spanning the full split axis; slice halves in VMEM."""
    c = o_ref.shape[-1]
    x = x_ref[...]
    a = x[:, :c].astype(jnp.float32)
    g = x[:, c:].astype(jnp.float32)
    sig = pl.reciprocal(1.0 + jnp.exp(-g))
    o_ref[...] = (a * sig).astype(o_ref.dtype)


def _sublane_multiple(dtype):
    itemsize = jnp.dtype(dtype).itemsize
    if itemsize >= 4:
        return 8
    if itemsize == 2:
        return 16
    return 32


def _pick_row_tile(rows, two_c, dtype):
    """Largest row tile targeting ~2 MiB of input bytes per grid step.

    With double-buffered inputs + output this is ~6 MiB resident, safe under
    v5e's 16 MiB scoped VMEM default (and v6e/v7x 32 MiB scoped), while big
    enough that the ~0.35 us per-grid-step overhead is negligible for this
    purely HBM-bandwidth-bound op.
    """
    itemsize = jnp.dtype(dtype).itemsize
    sub = _sublane_multiple(dtype)
    target_block_bytes = 2 * 1024 * 1024
    bytes_per_row = max(two_c * itemsize, 1)
    tile = (target_block_bytes // bytes_per_row) // sub * sub
    tile = max(tile, sub)
    if tile >= rows:
        return rows  # single block; "equal to full array dim" is always legal
    return tile


def glu(x, dim=-1):
    """Gated Linear Unit: split `x` in half along `dim`, return out * sigmoid(gate)."""
    ndim = x.ndim
    dim = dim % ndim
    two_c = x.shape[dim]
    assert two_c % 2 == 0, "GLU split axis must be even"
    c = two_c // 2

    needs_transpose = dim != ndim - 1
    if needs_transpose:
        # TODO(synk): express interior-dim splits directly via a 3-D BlockSpec
        # to avoid this extra HBM transpose pass (acceptable for now; dim=-1
        # — the Conformer FF case — takes the copy-free path below).
        perm = tuple(i for i in range(ndim) if i != dim) + (dim,)
        inv_perm = tuple(perm.index(i) for i in range(ndim))
        xt = jnp.transpose(x, perm)
    else:
        xt = x

    lead_shape = xt.shape[:-1]
    rows = math.prod(lead_shape) if lead_shape else 1
    x2d = xt.reshape(rows, two_c)  # metadata-only reshape (no HBM copy)

    row_tile = _pick_row_tile(rows, two_c, x.dtype)
    grid = (pl.cdiv(rows, row_tile),)  # ragged last block OK: elementwise op
    compiler_params = pltpu.CompilerParams(dimension_semantics=("parallel",))

    if c % 128 == 0:
        # Fast path: two lane-aligned half-blocks over the same HBM array.
        out2d = pl.pallas_call(
            _glu_kernel_split,
            out_shape=jax.ShapeDtypeStruct((rows, c), x.dtype),
            grid_spec=pltpu.PrefetchScalarGridSpec(
                num_scalar_prefetch=0,
                grid=grid,
                in_specs=[
                    pl.BlockSpec((row_tile, c), lambda i: (i, 0)),  # out half
                    pl.BlockSpec((row_tile, c), lambda i: (i, 1)),  # gate half
                ],
                out_specs=pl.BlockSpec((row_tile, c), lambda i: (i, 0)),
            ),
            compiler_params=compiler_params,
        )(x2d, x2d)
    else:
        # Fallback: full split axis in one block (last dim == full array dim).
        out2d = pl.pallas_call(
            _glu_kernel_fused,
            out_shape=jax.ShapeDtypeStruct((rows, c), x.dtype),
            grid_spec=pltpu.PrefetchScalarGridSpec(
                num_scalar_prefetch=0,
                grid=grid,
                in_specs=[pl.BlockSpec((row_tile, two_c), lambda i: (i, 0))],
                out_specs=pl.BlockSpec((row_tile, c), lambda i: (i, 0)),
            ),
            compiler_params=compiler_params,
        )(x2d)

    out = out2d.reshape(*lead_shape, c)
    if needs_transpose:
        out = jnp.transpose(out, inv_perm)
    return out


def glu_reference(x, dim=-1):
    out, gate = jnp.split(x, 2, axis=dim)
    return out * jax.nn.sigmoid(gate)


if __name__ == "__main__":
    key = jax.random.PRNGKey(0)
    k1, k2, k3 = jax.random.split(key, 3)

    # 1) Conformer FF-style input with lane-aligned halves (C = 128): fast path.
    x1 = jax.random.normal(k1, (2, 8, 256), dtype=jnp.float32)
    y1 = jax.block_until_ready(glu(x1, dim=-1))
    assert y1.shape == (2, 8, 128), y1.shape
    assert jnp.allclose(y1, glu_reference(x1, dim=-1), atol=1e-5, rtol=1e-5), \
        "fast-path mismatch vs reference"

    # 2) Small hidden (C = 32 < 128): fallback full-row path.
    x2 = jax.random.normal(k2, (2, 8, 64), dtype=jnp.float32)
    y2 = jax.block_until_ready(glu(x2, dim=-1))
    assert y2.shape == (2, 8, 32), y2.shape
    assert jnp.allclose(y2, glu_reference(x2, dim=-1), atol=1e-5, rtol=1e-5), \
        "fallback mismatch vs reference"

    # 3) Interior split dim (GLU(dim=1) style).
    x3 = jax.random.normal(k3, (2, 64, 8), dtype=jnp.float32)
    y3 = jax.block_until_ready(glu(x3, dim=1))
    assert y3.shape == (2, 32, 8), y3.shape
    assert jnp.allclose(y3, glu_reference(x3, dim=1), atol=1e-5, rtol=1e-5), \
        "interior-dim mismatch vs reference"

    print("KERNEL_OK")
</pallas_src>

<mosaic_0001>
module attributes {stable_mosaic.version = 11 : i64} {
  func.func @_glu_kernel_split(%arg0: i32, %arg1: memref<16x128xf32, #tpu.memory_space<vmem>>, %arg2: memref<16x128xf32, #tpu.memory_space<vmem>>, %arg3: memref<16x128xf32, #tpu.memory_space<vmem>>) attributes {dimension_semantics = [#tpu.dimension_semantics<parallel>], iteration_bounds = array<i64: 1>, scalar_prefetch = 0 : i64, scratch_operands = 0 : i64, tpu.core_type = #tpu.core_type<tc>, window_params = [{transform_indices = @transform_0, window_bounds = array<i64: 16, 128>}, {transform_indices = @transform_1, window_bounds = array<i64: 16, 128>}, {transform_indices = @transform_2, window_bounds = array<i64: 16, 128>}]} {
    %c0 = arith.constant 0 : index
    %c0_0 = arith.constant 0 : index
    %0 = vector.load %arg1[%c0, %c0_0] : memref<16x128xf32, #tpu.memory_space<vmem>>, vector<16x128xf32>
    %c0_1 = arith.constant 0 : index
    %c0_2 = arith.constant 0 : index
    %1 = vector.load %arg2[%c0_1, %c0_2] : memref<16x128xf32, #tpu.memory_space<vmem>>, vector<16x128xf32>
    %cst = arith.constant 0.000000e+00 : f32
    %2 = vector.broadcast %cst : f32 to vector<16x128xf32>
    %3 = arith.subf %2, %1 : vector<16x128xf32>
    %4 = math.exp %3 : vector<16x128xf32>
    %cst_3 = arith.constant 1.000000e+00 : f32
    %5 = vector.broadcast %cst_3 : f32 to vector<16x128xf32>
    %6 = arith.addf %5, %4 : vector<16x128xf32>
    %7 = tpu.reciprocal %6 : vector<16x128xf32> -> vector<16x128xf32>
    %8 = arith.mulf %0, %7 : vector<16x128xf32>
    %c0_4 = arith.constant 0 : index
    %c0_5 = arith.constant 0 : index
    %9 = vector.load %arg3[%c0_4, %c0_5] : memref<16x128xf32, #tpu.memory_space<vmem>>, vector<16x128xf32>
    tpu.vector_store %arg3[%c0_4, %c0_5], %8 {strides = array<i32>} : memref<16x128xf32, #tpu.memory_space<vmem>>, vector<16x128xf32>,
    return
  }
  func.func @transform_0(%arg0: i32) -> (i32, i32) {
    %c0_i32 = arith.constant 0 : i32
    %c0_i32_0 = arith.constant 0 : i32
    return %arg0, %c0_i32 : i32, i32
  }
  func.func @transform_1(%arg0: i32) -> (i32, i32) {
    %c1_i32 = arith.constant 1 : i32
    %c0_i32 = arith.constant 0 : i32
    return %arg0, %c1_i32 : i32, i32
  }
  func.func @transform_2(%arg0: i32) -> (i32, i32) {
    %c0_i32 = arith.constant 0 : i32
    %c0_i32_0 = arith.constant 0 : i32
    return %arg0, %c0_i32 : i32, i32
  }
}

</mosaic_0001>

<bundles_post_ra>
// kernel: tpu_custom_call.1
= control target key start
LH: loop header
LB: loop body
LE: loop exit
PB: predicated region body
PF: predicated region fallthrough
CT: control target
= control target key end

     0   :  { %7 = vsyncpa [#allocation3], 0  ;;  %s197_s0 = inlined_call_operand.hbm [shape: f32[16,256], index: 0, kind: input, shape index: {}]   ;;  %s198_s1 = inlined_call_operand.hbm [shape: f32[16,256], index: 1, kind: input, shape index: {}]   ;;  %s199_s2 = inlined_call_operand.hbm [shape: f32[16,128], index: 2, kind: output, shape index: {}]  }
   0x1   :  { %8 = vsyncpa [#allocation6], 0 }
   0x2   :  { %9 = vsyncpa [#allocation4], 0  ;;  %s160_s9 = smov [#allocation2]  }
   0x3   :  { %s15_s10 = sshll.u32 %s160_s9, 4  ;;  %s16_s10 = int_to_ptr.vmem [resolvable:$true] %s15_s10 }
   0x4   :  { %s99_s11 = scalar_lea.vmem %s16_s10, 256  ;;  %p104_p1 = scmp.lt.s32.totalorder %s16_s10, %s16_s10 }
   0x5   :  { %p100_p0 = scmp.ne.s32.totalorder %s16_s10, %s99_s11  ;;  %p105_p2 = scmp.lt.s32.totalorder %s99_s11, %s99_s11 }
   0x7   :  { %p106_p3 = por %p105_p2, %p104_p1 }
   0x9   :  { %p107_p4 = pnand %p106_p3, %p100_p0 }
   0xb   :  { %110 = shalt.err (!%p107_p4)
}
   0xc   :  { %s161_s12 = smov 256   ;;  %s162_s13 = smov 128  }
   0xd   :  { %s163_s14 = smov 8   ;;  %s27_s19 = scalar_lea.hbm %s198_s1, 128 }
   0xe   :  { %21 = dma.hbm_to_vmem [thread:$0]  %s197_s0, 256, %s16_s10, [#allocation3], %s161_s12, %s162_s13, %s163_s14  }
   0xf   :  { %s164_s20 = smov [#allocation5]  }
  0x10   :  { %s28_s21 = sshll.u32 %s164_s20, 4  ;;  %s29_s21 = int_to_ptr.vmem [resolvable:$true] %s28_s21 }
  0x11   :  { %s121_s22 = scalar_lea.vmem %s29_s21, 256  ;;  %p126_p6 = scmp.lt.s32.totalorder %s29_s21, %s29_s21 }
  0x12   :  { %p122_p5 = scmp.ne.s32.totalorder %s29_s21, %s121_s22  ;;  %p127_p7 = scmp.lt.s32.totalorder %s121_s22, %s121_s22 }
  0x14   :  { %p128_p8 = por %p127_p7, %p126_p6 }
  0x16   :  { %p129_p9 = pnand %p128_p8, %p122_p5 }
  0x18   :  { %132 = shalt.err (!%p129_p9)
}
  0x19   :  { %34 = dma.hbm_to_vmem [thread:$0]  %s27_s19, 256, %s29_s21, [#allocation6], %s161_s12, %s162_s13, %s163_s14  }
  0x1a   :  { %154 = dma.done.wait [#allocation3], 256  }
  0x1b   :  { %155 = vsyncadd [#allocation3], 4294967040 }
  0x1c   :  { %156 = dma.done.wait [#allocation6], 256  }
  0x1d   :  { %157 = vsyncadd [#allocation6], 4294967040  ;;  %v43_v0 = vld [vmem:[#allocation5] sm:$0xff]  ;;  %v44_v2 = vld [vmem:[#allocation5 + $0x8] sm:$0xff]  ;;  %s165_s0 = smov [#allocation7]  }
  0x1e   :  { %v45_v1 = vsub.f32 0.0, %v43_v0  ;;  %v46_v3 = vsub.f32 0.0, %v44_v2  ;;  %v41_v10 = vld [vmem:[#allocation2] sm:$0xff]  ;;  %v42_v11 = vld [vmem:[#allocation2 + $0x8] sm:$0xff]  ;;  %s64_s1 = sshll.u32 %s165_s0, 4  ;;  %s65_s1 = int_to_ptr.vmem [resolvable:$true] %s64_s1 }
  0x1f   :  { %s134_s23 = scalar_lea.vmem %s65_s1, 256  ;;  %p139_p11 = scmp.lt.s32.totalorder %s65_s1, %s65_s1 }
  0x20   :  { %v47_v4 = vmul.f32 1.442695, %v45_v1  ;;  %v49_v5 = vmul.f32 1.442695, %v46_v3  ;;  %p135_p10 = scmp.ne.s32.totalorder %s65_s1, %s134_s23  ;;  %p140_p12 = scmp.lt.s32.totalorder %s134_s23, %s134_s23 }
  0x22   :  { %83 = vpow2.f32 %v47_v4  ;;  %p141_p13 = por %p140_p12, %p139_p11 }
  0x23   :  { %85 = vpow2.f32 %v49_v5 }
  0x24   :  { %p142_p0 = pnand %p141_p13, %p135_p10 }
  0x2f   :  { %v84_v6 = vpop.eup %83 }
  0x30   :  { %v86_v7 = vpop.eup %85  ;;  %v51_v8 = vadd.f32 1.0, %v84_v6 }
  0x31   :  { %v52_v9 = vadd.f32 1.0, %v86_v7 }
  0x32   :  { %87 = vrcp.f32 %v51_v8 }
  0x33   :  { %89 = vrcp.f32 %v52_v9 }
  0x3f   :  { %v88_v12 = vpop.eup %87 }
  0x40   :  { %v90_v13 = vpop.eup %89  ;;  %v55_v14 = vmul.f32 %v88_v12, %v41_v10 }
  0x41   :  { %v56_v15 = vmul.f32 %v90_v13, %v42_v11 }
  0x42   :  { %57 = vst [vmem:[#allocation7] sm:$0xff] %v55_v14 }
  0x43   :  { %58 = vst [vmem:[#allocation7 + $0x8] sm:$0xff] %v56_v15 }
  0x44   :  { %145 = shalt.err (!%p142_p0)
}
  0x45   :  { %70 = dma.vmem_to_hbm [thread:$0]  %s65_s1, 256, %s199_s2, [#allocation4], %s162_s13, %s162_s13, %s163_s14  }
  0x46   :  { %158 = dma.done.wait [#allocation4], 256  }
  0x47   :  { %159 = vsyncadd [#allocation4], 4294967040 }
  0x48   :  { %74 = vsyncpa [#allocation3], 1 }
  0x49   :  { %75 = vsyncpa [#allocation6], 1 }
  0x4a   :  { %76 = vsyncpa [#allocation4], 1 }

</bundles_post_ra>
